<compile_context>
chip_gen: v7x
topology: tpu7x:2x2x1
jax: 0.10.0
libtpu: 0.0.40
codegen_flags: <defaults>
</compile_context>

<pallas_src>
import numpy as np
import jax
import jax.numpy as jnp
from jax.experimental import pallas as pl
from jax.experimental.pallas import tpu as pltpu

# ---------------- deterministic hyper-parameters (the "args" object) ------------
SIGMA = 0.5                     # -> Gaussian kernel size M = 5
TAU = 0.1
CNSTS = (0.5, 2.0)
ITER_NUM = 3
ALPHA = 0.5

EPSILON = CNSTS[0] / TAU                    # args.cnsts[0] / args.tau
LAMBDAA = CNSTS[0] * CNSTS[1] / TAU         # args.cnsts[0] * args.cnsts[1] / args.tau
M = max(4 * int(2 * SIGMA) + 1, 5)          # Gaussian kernel size
P = M // 2                                  # "same" padding
N_ITER = max(abs(ITER_NUM), 1)

LAM_OVER_EPS = LAMBDAA / EPSILON            # folds the "/ epsilon" into lam_b
INV_TAU_EPS = 1.0 / (TAU * EPSILON)         # folds "(u-x)/tau/epsilon" into one mul


# --------------------------- fixed (non-learnable) weights ----------------------
def gauss_kernel_2d_np(sigma):
    """2-D Gaussian kernel, matches GaussKernel() in the PyTorch spec (for ref)."""
    M_ = max(4 * int(2 * sigma) + 1, 5)
    xx = np.arange(M_) - (M_ - 1.0) / 2.0
    gx = xx.reshape(M_, 1) * np.ones((1, M_))
    gy = np.ones((M_, 1)) * xx.reshape(1, M_)
    d2 = gx ** 2 + gy ** 2
    w = np.exp(-d2 / (2.0 * sigma ** 2))
    return (w / w.sum()).astype(np.float32)


def gauss_kernel_1d_np(sigma):
    """1-D factor of the Gaussian: GW == outer(g1d, g1d) exactly."""
    M_ = max(4 * int(2 * sigma) + 1, 5)
    xx = np.arange(M_) - (M_ - 1.0) / 2.0
    g = np.exp(-xx * xx / (2.0 * sigma ** 2))
    return (g / g.sum()).astype(np.float32)


def toeplitz_same_np(n, k1d):
    """T such that (v @ T) == 1-D 'same' (zero-padded) correlation of v (last axis)."""
    Mk = k1d.shape[0]
    Pk = Mk // 2
    T = np.zeros((n, n), dtype=np.float32)
    for d in range(Mk):
        off = d - Pk
        for b in range(n):
            a = b + off
            if 0 <= a < n:
                T[a, b] = k1d[d]
    return T


GW = gauss_kernel_2d_np(SIGMA)   # used only by the pure-JAX reference


def _sigmoid(z):
    return 1.0 / (1.0 + jnp.exp(-z))


# --------------------------------- Pallas kernel --------------------------------
def sigact_kernel(x_ref, c_ref, th_ref, tw_ref, u_ref):
    x = x_ref[...]           # (B, H, Wl) f32: B channel-slab groups in this tile
    c = c_ref[...]           # (B, H, Wl) f32
    th = th_ref[...]         # (B, H, H)   bf16: H-direction "same" Gaussian Toeplitz
    tw = tw_ref[...]         # (B, Wl, Wl) bf16: W-direction (block-diag over packed slabs)

    # lambdaa * getb(c) / epsilon, computed once (getb(c) == sigmoid(10*c))
    lam_be = LAM_OVER_EPS * _sigmoid(10.0 * c)

    def convG(v):
        # depthwise separable Gaussian "same" conv == T_H^T @ v @ T_W'
        # -> two batched bf16 MXU matmuls with f32 accumulation
        v16 = v.astype(jnp.bfloat16)
        t = jnp.einsum('bhw,bwk->bhk', v16, tw, preferred_element_type=jnp.float32)
        return jnp.einsum('bhk,bkw->bhw', th, t.astype(jnp.bfloat16),
                          preferred_element_type=jnp.float32)

    # u = sig(-(lambdaa * b * convG(1 - 2x)) / epsilon)
    u = _sigmoid(-lam_be * convG(1.0 - 2.0 * x))

    for _ in range(N_ITER):
        z = (u - x) * INV_TAU_EPS + lam_be * convG(1.0 - 2.0 * u)
        u = (1.0 - ALPHA) * u + ALPHA * _sigmoid(-z)

    u_ref[...] = u


def sigact_forward(x, c, *, tile_nc=None):
    """x, c: [N, C, H, W] float32 -> u: [N, C, H, W] float32."""
    N, C, H, W = x.shape
    NC = N * C

    # --- lane packing: put k channel slabs side by side along the lane axis --------
    if W >= 128:
        k = 1
    else:
        k = max(1, 128 // W)
        while k > 1 and NC % k != 0:      # need a clean split to avoid any padding
            k -= 1
    G = NC // k                            # number of packed slab-groups
    Wl = k * W                             # lane-dense width (128 when 128 % W == 0)

    x2 = x.reshape(NC, H, W).astype(jnp.float32)
    c2 = c.reshape(NC, H, W).astype(jnp.float32)
    if k > 1:
        # (G,k,H,W) -> (G,H,k,W) -> (G,H,k*W): wrapper-side layout plumbing
        x2 = x2.reshape(G, k, H, W).transpose(0, 2, 1, 3).reshape(G, H, Wl)
        c2 = c2.reshape(G, k, H, W).transpose(0, 2, 1, 3).reshape(G, H, Wl)
    else:
        x2 = x2.reshape(G, H, Wl)
        c2 = c2.reshape(G, H, Wl)

    # --- choose how many slab-groups each grid step processes ----------------------
    if tile_nc is None:
        # per-slab working set: x/c/out double-buffered f32 tiles (6 copies)
        # + ~8 live f32 intermediates + the two resident bf16 conv matrices (x2 bufs)
        per_slab = H * Wl * 4 * 14 + (H * H + Wl * Wl) * 2 * 2
        budget = 8 * 1024 * 1024           # conservative for every TPU generation
        tile_nc = max(1, budget // per_slab)
    tile_nc = int(min(tile_nc, G))
    if G >= 2:
        tile_nc = max(1, min(tile_nc, G // 2))   # keep grid >= 2 (v7x: 2 TensorCores)
    while G % tile_nc != 0:                       # exact division -> no pad / remainder
        tile_nc -= 1
    grid = (G // tile_nc,)

    # --- fixed separable-Gaussian Toeplitz constants (bf16, resident in VMEM) ------
    g1 = gauss_kernel_1d_np(SIGMA)
    t_h = toeplitz_same_np(H, g1).T                           # left-multiply: conv along H
    t_w = np.kron(np.eye(k, dtype=np.float32),                # right-multiply: conv along W,
                  toeplitz_same_np(W, g1))                    # block-diag over packed slabs
    th_b = jnp.asarray(np.broadcast_to(t_h, (tile_nc, H, H)), dtype=jnp.bfloat16)
    tw_b = jnp.asarray(np.broadcast_to(t_w, (tile_nc, Wl, Wl)), dtype=jnp.bfloat16)

    out = pl.pallas_call(
        sigact_kernel,
        grid=grid,
        out_shape=jax.ShapeDtypeStruct((G, H, Wl), jnp.float32),
        in_specs=[
            pl.BlockSpec((tile_nc, H, Wl), lambda i: (i, 0, 0)),
            pl.BlockSpec((tile_nc, H, Wl), lambda i: (i, 0, 0)),
            pl.BlockSpec((tile_nc, H, H), lambda i: (0, 0, 0)),    # constant, resident
            pl.BlockSpec((tile_nc, Wl, Wl), lambda i: (0, 0, 0)),  # constant, resident
        ],
        out_specs=pl.BlockSpec((tile_nc, H, Wl), lambda i: (i, 0, 0)),
        compiler_params=pltpu.CompilerParams(
            dimension_semantics=("parallel",),
            vmem_limit_bytes=32 * 1024 * 1024,
        ),
    )(x2, c2, th_b, tw_b)

    # --- undo lane packing -----------------------------------------------------------
    if k > 1:
        out = out.reshape(G, H, k, W).transpose(0, 2, 1, 3).reshape(NC, H, W)
    else:
        out = out.reshape(NC, H, W)
    return out.reshape(N, C, H, W)


# ------------------------- pure-JAX reference (for checking) --------------------
def ref_forward(x, c):
    x = x.astype(jnp.float32)
    c = c.astype(jnp.float32)
    w = jnp.asarray(GW)

    def conv(v):
        vp = jnp.pad(v, ((0, 0), (0, 0), (P, P), (P, P)))
        out = jnp.zeros_like(v)
        H, W = v.shape[2], v.shape[3]
        for di in range(M):
            for dj in range(M):
                out = out + w[di, dj] * vp[:, :, di:di + H, dj:dj + W]
        return out

    lam_b = LAMBDAA * _sigmoid(10.0 * c)
    u = _sigmoid(-(lam_b * conv(1.0 - 2.0 * x)) / EPSILON)
    for _ in range(N_ITER):
        uu = (u - x) / TAU + lam_b * conv(1.0 - 2.0 * u)
        uu = _sigmoid(-uu / EPSILON)
        u = (1.0 - ALPHA) * u + ALPHA * uu
    return u


if __name__ == "__main__":
    key = jax.random.PRNGKey(0)
    key_x, key_c = jax.random.split(key)
    x = jax.random.uniform(key_x, (2, 4, 16, 16), dtype=jnp.float32)   # probability map
    c = jax.random.normal(key_c, (2, 4, 16, 16), dtype=jnp.float32)    # contour/weight map

    out = jax.block_until_ready(sigact_forward(x, c))
    ref = jax.block_until_ready(ref_forward(x, c))

    assert out.shape == (2, 4, 16, 16)
    # bf16 MXU operands (with f32 accumulation) vs. the f32 tap-sum reference:
    # worst-case deviation is ~1e-2 on this iteration count, so use 2e-2 tolerances.
    np.testing.assert_allclose(np.asarray(out), np.asarray(ref), rtol=2e-2, atol=2e-2)
    print("KERNEL_OK")
</pallas_src>

<mosaic_0001>
module attributes {stable_mosaic.version = 11 : i64} {
  func.func @sigact_kernel(%arg0: i32, %arg1: memref<1x16x128xf32, #tpu.memory_space<vmem>>, %arg2: memref<1x16x128xf32, #tpu.memory_space<vmem>>, %arg3: memref<1x16x16xbf16, #tpu.memory_space<vmem>>, %arg4: memref<1x128x128xbf16, #tpu.memory_space<vmem>>, %arg5: memref<1x16x128xf32, #tpu.memory_space<vmem>>) attributes {dimension_semantics = [#tpu.dimension_semantics<parallel>], iteration_bounds = array<i64: 1>, scalar_prefetch = 0 : i64, scratch_operands = 0 : i64, tpu.core_type = #tpu.core_type<tc>, window_params = [{transform_indices = @transform_0, window_bounds = array<i64: 1, 16, 128>}, {transform_indices = @transform_1, window_bounds = array<i64: 1, 16, 128>}, {pipeline_mode = #tpu.pipeline_mode<synchronous>, transform_indices = @transform_2, window_bounds = array<i64: 1, 16, 16>}, {pipeline_mode = #tpu.pipeline_mode<synchronous>, transform_indices = @transform_3, window_bounds = array<i64: 1, 128, 128>}, {transform_indices = @transform_4, window_bounds = array<i64: 1, 16, 128>}]} {
    %c0 = arith.constant 0 : index
    %c0_0 = arith.constant 0 : index
    %c0_1 = arith.constant 0 : index
    %0 = vector.load %arg1[%c0, %c0_0, %c0_1] : memref<1x16x128xf32, #tpu.memory_space<vmem>>, vector<1x16x128xf32>
    %c0_2 = arith.constant 0 : index
    %c0_3 = arith.constant 0 : index
    %c0_4 = arith.constant 0 : index
    %1 = vector.load %arg2[%c0_2, %c0_3, %c0_4] : memref<1x16x128xf32, #tpu.memory_space<vmem>>, vector<1x16x128xf32>
    %c0_5 = arith.constant 0 : index
    %c0_6 = arith.constant 0 : index
    %c0_7 = arith.constant 0 : index
    %2 = vector.load %arg3[%c0_5, %c0_6, %c0_7] : memref<1x16x16xbf16, #tpu.memory_space<vmem>>, vector<1x16x16xbf16>
    %c0_8 = arith.constant 0 : index
    %c0_9 = arith.constant 0 : index
    %c0_10 = arith.constant 0 : index
    %3 = vector.load %arg4[%c0_8, %c0_9, %c0_10] : memref<1x128x128xbf16, #tpu.memory_space<vmem>>, vector<1x128x128xbf16>
    %cst = arith.constant 1.000000e+01 : f32
    %4 = vector.broadcast %cst : f32 to vector<1x16x128xf32>
    %5 = arith.mulf %4, %1 : vector<1x16x128xf32>
    %cst_11 = arith.constant 0.000000e+00 : f32
    %6 = vector.broadcast %cst_11 : f32 to vector<1x16x128xf32>
    %7 = arith.subf %6, %5 : vector<1x16x128xf32>
    %8 = math.exp %7 : vector<1x16x128xf32>
    %cst_12 = arith.constant 1.000000e+00 : f32
    %9 = vector.broadcast %cst_12 : f32 to vector<1x16x128xf32>
    %10 = arith.addf %9, %8 : vector<1x16x128xf32>
    %cst_13 = arith.constant 1.000000e+00 : f32
    %11 = vector.broadcast %cst_13 : f32 to vector<1x16x128xf32>
    %12 = arith.divf %11, %10 : vector<1x16x128xf32>
    %cst_14 = arith.constant 2.000000e+00 : f32
    %13 = vector.broadcast %cst_14 : f32 to vector<1x16x128xf32>
    %14 = arith.mulf %13, %12 : vector<1x16x128xf32>
    %cst_15 = arith.constant 0.000000e+00 : f32
    %15 = vector.broadcast %cst_15 : f32 to vector<1x16x128xf32>
    %16 = arith.subf %15, %14 : vector<1x16x128xf32>
    %cst_16 = arith.constant 2.000000e+00 : f32
    %17 = vector.broadcast %cst_16 : f32 to vector<1x16x128xf32>
    %18 = arith.mulf %17, %0 : vector<1x16x128xf32>
    %cst_17 = arith.constant 1.000000e+00 : f32
    %19 = vector.broadcast %cst_17 : f32 to vector<1x16x128xf32>
    %20 = arith.subf %19, %18 : vector<1x16x128xf32>
    %21 = arith.truncf %20 : vector<1x16x128xf32> to vector<1x16x128xbf16>
    "tpu.trace_start"() <{level = 10 : i32, message = "bhw,bwk->bhk"}> : () -> ()
    %cst_18 = arith.constant dense<0.000000e+00> : vector<1x16x128xf32>
    %22 = tpu.matmul %21, %3, %cst_18 {dimension_numbers = #tpu.dot_dimension_numbers<[2], [1], [1], [2], [0, 0, 0, 1, 1, 2], [0], [0]>} : vector<1x16x128xbf16>, vector<1x128x128xbf16>, vector<1x16x128xf32> -> vector<1x16x128xf32>
    "tpu.trace_stop"() : () -> ()
    %23 = arith.truncf %22 : vector<1x16x128xf32> to vector<1x16x128xbf16>
    "tpu.trace_start"() <{level = 10 : i32, message = "bhk,bkw->bhw"}> : () -> ()
    %cst_19 = arith.constant dense<0.000000e+00> : vector<1x16x128xf32>
    %24 = tpu.matmul %2, %23, %cst_19 {dimension_numbers = #tpu.dot_dimension_numbers<[2], [1], [1], [2], [0, 0, 0, 1, 1, 2], [0], [0]>} : vector<1x16x16xbf16>, vector<1x16x128xbf16>, vector<1x16x128xf32> -> vector<1x16x128xf32>
    "tpu.trace_stop"() : () -> ()
    %25 = arith.mulf %16, %24 : vector<1x16x128xf32>
    %cst_20 = arith.constant 0.000000e+00 : f32
    %26 = vector.broadcast %cst_20 : f32 to vector<1x16x128xf32>
    %27 = arith.subf %26, %25 : vector<1x16x128xf32>
    %28 = math.exp %27 : vector<1x16x128xf32>
    %cst_21 = arith.constant 1.000000e+00 : f32
    %29 = vector.broadcast %cst_21 : f32 to vector<1x16x128xf32>
    %30 = arith.addf %29, %28 : vector<1x16x128xf32>
    %cst_22 = arith.constant 1.000000e+00 : f32
    %31 = vector.broadcast %cst_22 : f32 to vector<1x16x128xf32>
    %32 = arith.divf %31, %30 : vector<1x16x128xf32>
    %33 = arith.subf %32, %0 : vector<1x16x128xf32>
    %cst_23 = arith.constant 2.000000e+00 : f32
    %34 = vector.broadcast %cst_23 : f32 to vector<1x16x128xf32>
    %35 = arith.mulf %33, %34 : vector<1x16x128xf32>
    %cst_24 = arith.constant 2.000000e+00 : f32
    %36 = vector.broadcast %cst_24 : f32 to vector<1x16x128xf32>
    %37 = arith.mulf %36, %32 : vector<1x16x128xf32>
    %cst_25 = arith.constant 1.000000e+00 : f32
    %38 = vector.broadcast %cst_25 : f32 to vector<1x16x128xf32>
    %39 = arith.subf %38, %37 : vector<1x16x128xf32>
    %40 = arith.truncf %39 : vector<1x16x128xf32> to vector<1x16x128xbf16>
    "tpu.trace_start"() <{level = 10 : i32, message = "bhw,bwk->bhk"}> : () -> ()
    %cst_26 = arith.constant dense<0.000000e+00> : vector<1x16x128xf32>
    %41 = tpu.matmul %40, %3, %cst_26 {dimension_numbers = #tpu.dot_dimension_numbers<[2], [1], [1], [2], [0, 0, 0, 1, 1, 2], [0], [0]>} : vector<1x16x128xbf16>, vector<1x128x128xbf16>, vector<1x16x128xf32> -> vector<1x16x128xf32>
    "tpu.trace_stop"() : () -> ()
    %42 = arith.truncf %41 : vector<1x16x128xf32> to vector<1x16x128xbf16>
    "tpu.trace_start"() <{level = 10 : i32, message = "bhk,bkw->bhw"}> : () -> ()
    %cst_27 = arith.constant dense<0.000000e+00> : vector<1x16x128xf32>
    %43 = tpu.matmul %2, %42, %cst_27 {dimension_numbers = #tpu.dot_dimension_numbers<[2], [1], [1], [2], [0, 0, 0, 1, 1, 2], [0], [0]>} : vector<1x16x16xbf16>, vector<1x16x128xbf16>, vector<1x16x128xf32> -> vector<1x16x128xf32>
    "tpu.trace_stop"() : () -> ()
    %44 = arith.mulf %14, %43 : vector<1x16x128xf32>
    %45 = arith.addf %35, %44 : vector<1x16x128xf32>
    %cst_28 = arith.constant 5.000000e-01 : f32
    %46 = vector.broadcast %cst_28 : f32 to vector<1x16x128xf32>
    %47 = arith.mulf %46, %32 : vector<1x16x128xf32>
    %cst_29 = arith.constant 0.000000e+00 : f32
    %48 = vector.broadcast %cst_29 : f32 to vector<1x16x128xf32>
    %49 = arith.subf %48, %45 : vector<1x16x128xf32>
    %cst_30 = arith.constant 0.000000e+00 : f32
    %50 = vector.broadcast %cst_30 : f32 to vector<1x16x128xf32>
    %51 = arith.subf %50, %49 : vector<1x16x128xf32>
    %52 = math.exp %51 : vector<1x16x128xf32>
    %cst_31 = arith.constant 1.000000e+00 : f32
    %53 = vector.broadcast %cst_31 : f32 to vector<1x16x128xf32>
    %54 = arith.addf %53, %52 : vector<1x16x128xf32>
    %cst_32 = arith.constant 1.000000e+00 : f32
    %55 = vector.broadcast %cst_32 : f32 to vector<1x16x128xf32>
    %56 = arith.divf %55, %54 : vector<1x16x128xf32>
    %cst_33 = arith.constant 5.000000e-01 : f32
    %57 = vector.broadcast %cst_33 : f32 to vector<1x16x128xf32>
    %58 = arith.mulf %57, %56 : vector<1x16x128xf32>
    %59 = arith.addf %47, %58 : vector<1x16x128xf32>
    %60 = arith.subf %59, %0 : vector<1x16x128xf32>
    %cst_34 = arith.constant 2.000000e+00 : f32
    %61 = vector.broadcast %cst_34 : f32 to vector<1x16x128xf32>
    %62 = arith.mulf %60, %61 : vector<1x16x128xf32>
    %cst_35 = arith.constant 2.000000e+00 : f32
    %63 = vector.broadcast %cst_35 : f32 to vector<1x16x128xf32>
    %64 = arith.mulf %63, %59 : vector<1x16x128xf32>
    %cst_36 = arith.constant 1.000000e+00 : f32
    %65 = vector.broadcast %cst_36 : f32 to vector<1x16x128xf32>
    %66 = arith.subf %65, %64 : vector<1x16x128xf32>
    %67 = arith.truncf %66 : vector<1x16x128xf32> to vector<1x16x128xbf16>
    "tpu.trace_start"() <{level = 10 : i32, message = "bhw,bwk->bhk"}> : () -> ()
    %cst_37 = arith.constant dense<0.000000e+00> : vector<1x16x128xf32>
    %68 = tpu.matmul %67, %3, %cst_37 {dimension_numbers = #tpu.dot_dimension_numbers<[2], [1], [1], [2], [0, 0, 0, 1, 1, 2], [0], [0]>} : vector<1x16x128xbf16>, vector<1x128x128xbf16>, vector<1x16x128xf32> -> vector<1x16x128xf32>
    "tpu.trace_stop"() : () -> ()
    %69 = arith.truncf %68 : vector<1x16x128xf32> to vector<1x16x128xbf16>
    "tpu.trace_start"() <{level = 10 : i32, message = "bhk,bkw->bhw"}> : () -> ()
    %cst_38 = arith.constant dense<0.000000e+00> : vector<1x16x128xf32>
    %70 = tpu.matmul %2, %69, %cst_38 {dimension_numbers = #tpu.dot_dimension_numbers<[2], [1], [1], [2], [0, 0, 0, 1, 1, 2], [0], [0]>} : vector<1x16x16xbf16>, vector<1x16x128xbf16>, vector<1x16x128xf32> -> vector<1x16x128xf32>
    "tpu.trace_stop"() : () -> ()
    %71 = arith.mulf %14, %70 : vector<1x16x128xf32>
    %72 = arith.addf %62, %71 : vector<1x16x128xf32>
    %cst_39 = arith.constant 5.000000e-01 : f32
    %73 = vector.broadcast %cst_39 : f32 to vector<1x16x128xf32>
    %74 = arith.mulf %73, %59 : vector<1x16x128xf32>
    %cst_40 = arith.constant 0.000000e+00 : f32
    %75 = vector.broadcast %cst_40 : f32 to vector<1x16x128xf32>
    %76 = arith.subf %75, %72 : vector<1x16x128xf32>
    %cst_41 = arith.constant 0.000000e+00 : f32
    %77 = vector.broadcast %cst_41 : f32 to vector<1x16x128xf32>
    %78 = arith.subf %77, %76 : vector<1x16x128xf32>
    %79 = math.exp %78 : vector<1x16x128xf32>
    %cst_42 = arith.constant 1.000000e+00 : f32
    %80 = vector.broadcast %cst_42 : f32 to vector<1x16x128xf32>
    %81 = arith.addf %80, %79 : vector<1x16x128xf32>
    %cst_43 = arith.constant 1.000000e+00 : f32
    %82 = vector.broadcast %cst_43 : f32 to vector<1x16x128xf32>
    %83 = arith.divf %82, %81 : vector<1x16x128xf32>
    %cst_44 = arith.constant 5.000000e-01 : f32
    %84 = vector.broadcast %cst_44 : f32 to vector<1x16x128xf32>
    %85 = arith.mulf %84, %83 : vector<1x16x128xf32>
    %86 = arith.addf %74, %85 : vector<1x16x128xf32>
    %87 = arith.subf %86, %0 : vector<1x16x128xf32>
    %cst_45 = arith.constant 2.000000e+00 : f32
    %88 = vector.broadcast %cst_45 : f32 to vector<1x16x128xf32>
    %89 = arith.mulf %87, %88 : vector<1x16x128xf32>
    %cst_46 = arith.constant 2.000000e+00 : f32
    %90 = vector.broadcast %cst_46 : f32 to vector<1x16x128xf32>
    %91 = arith.mulf %90, %86 : vector<1x16x128xf32>
    %cst_47 = arith.constant 1.000000e+00 : f32
    %92 = vector.broadcast %cst_47 : f32 to vector<1x16x128xf32>
    %93 = arith.subf %92, %91 : vector<1x16x128xf32>
    %94 = arith.truncf %93 : vector<1x16x128xf32> to vector<1x16x128xbf16>
    "tpu.trace_start"() <{level = 10 : i32, message = "bhw,bwk->bhk"}> : () -> ()
    %cst_48 = arith.constant dense<0.000000e+00> : vector<1x16x128xf32>
    %95 = tpu.matmul %94, %3, %cst_48 {dimension_numbers = #tpu.dot_dimension_numbers<[2], [1], [1], [2], [0, 0, 0, 1, 1, 2], [0], [0]>} : vector<1x16x128xbf16>, vector<1x128x128xbf16>, vector<1x16x128xf32> -> vector<1x16x128xf32>
    "tpu.trace_stop"() : () -> ()
    %96 = arith.truncf %95 : vector<1x16x128xf32> to vector<1x16x128xbf16>
    "tpu.trace_start"() <{level = 10 : i32, message = "bhk,bkw->bhw"}> : () -> ()
    %cst_49 = arith.constant dense<0.000000e+00> : vector<1x16x128xf32>
    %97 = tpu.matmul %2, %96, %cst_49 {dimension_numbers = #tpu.dot_dimension_numbers<[2], [1], [1], [2], [0, 0, 0, 1, 1, 2], [0], [0]>} : vector<1x16x16xbf16>, vector<1x16x128xbf16>, vector<1x16x128xf32> -> vector<1x16x128xf32>
    "tpu.trace_stop"() : () -> ()
    %98 = arith.mulf %14, %97 : vector<1x16x128xf32>
    %99 = arith.addf %89, %98 : vector<1x16x128xf32>
    %cst_50 = arith.constant 5.000000e-01 : f32
    %100 = vector.broadcast %cst_50 : f32 to vector<1x16x128xf32>
    %101 = arith.mulf %100, %86 : vector<1x16x128xf32>
    %cst_51 = arith.constant 0.000000e+00 : f32
    %102 = vector.broadcast %cst_51 : f32 to vector<1x16x128xf32>
    %103 = arith.subf %102, %99 : vector<1x16x128xf32>
    %cst_52 = arith.constant 0.000000e+00 : f32
    %104 = vector.broadcast %cst_52 : f32 to vector<1x16x128xf32>
    %105 = arith.subf %104, %103 : vector<1x16x128xf32>
    %106 = math.exp %105 : vector<1x16x128xf32>
    %cst_53 = arith.constant 1.000000e+00 : f32
    %107 = vector.broadcast %cst_53 : f32 to vector<1x16x128xf32>
    %108 = arith.addf %107, %106 : vector<1x16x128xf32>
    %cst_54 = arith.constant 1.000000e+00 : f32
    %109 = vector.broadcast %cst_54 : f32 to vector<1x16x128xf32>
    %110 = arith.divf %109, %108 : vector<1x16x128xf32>
    %cst_55 = arith.constant 5.000000e-01 : f32
    %111 = vector.broadcast %cst_55 : f32 to vector<1x16x128xf32>
    %112 = arith.mulf %111, %110 : vector<1x16x128xf32>
    %113 = arith.addf %101, %112 : vector<1x16x128xf32>
    %c0_56 = arith.constant 0 : index
    %c0_57 = arith.constant 0 : index
    %c0_58 = arith.constant 0 : index
    %114 = vector.load %arg5[%c0_56, %c0_57, %c0_58] : memref<1x16x128xf32, #tpu.memory_space<vmem>>, vector<1x16x128xf32>
    tpu.vector_store %arg5[%c0_56, %c0_57, %c0_58], %113 {strides = array<i32>} : memref<1x16x128xf32, #tpu.memory_space<vmem>>, vector<1x16x128xf32>,
    return
  }
  func.func @transform_0(%arg0: i32) -> (i32, i32, i32) {
    %c0_i32 = arith.constant 0 : i32
    %c0_i32_0 = arith.constant 0 : i32
    %c0_i32_1 = arith.constant 0 : i32
    return %arg0, %c0_i32, %c0_i32_0 : i32, i32, i32
  }
  func.func @transform_1(%arg0: i32) -> (i32, i32, i32) {
    %c0_i32 = arith.constant 0 : i32
    %c0_i32_0 = arith.constant 0 : i32
    %c0_i32_1 = arith.constant 0 : i32
    return %arg0, %c0_i32, %c0_i32_0 : i32, i32, i32
  }
  func.func @transform_2(%arg0: i32) -> (i32, i32, i32) {
    %c0_i32 = arith.constant 0 : i32
    %c0_i32_0 = arith.constant 0 : i32
    %c0_i32_1 = arith.constant 0 : i32
    %c0_i32_2 = arith.constant 0 : i32
    return %c0_i32, %c0_i32_0, %c0_i32_1 : i32, i32, i32
  }
  func.func @transform_3(%arg0: i32) -> (i32, i32, i32) {
    %c0_i32 = arith.constant 0 : i32
    %c0_i32_0 = arith.constant 0 : i32
    %c0_i32_1 = arith.constant 0 : i32
    %c0_i32_2 = arith.constant 0 : i32
    return %c0_i32, %c0_i32_0, %c0_i32_1 : i32, i32, i32
  }
  func.func @transform_4(%arg0: i32) -> (i32, i32, i32) {
    %c0_i32 = arith.constant 0 : i32
    %c0_i32_0 = arith.constant 0 : i32
    %c0_i32_1 = arith.constant 0 : i32
    return %arg0, %c0_i32, %c0_i32_0 : i32, i32, i32
  }
}

</mosaic_0001>

<bundles_post_ra>
// kernel: tpu_custom_call.1
= control target key start
LH: loop header
LB: loop body
LE: loop exit
PB: predicated region body
PF: predicated region fallthrough
CT: control target
= control target key end

     0   :  { %9 = vsyncpa [#allocation3], 0  ;;  %s1237_s0 = inlined_call_operand.hbm [shape: f32[1,16,128], index: 0, kind: input, shape index: {}]   ;;  %s1238_s1 = inlined_call_operand.hbm [shape: f32[1,16,128], index: 1, kind: input, shape index: {}]   ;;  %s1239_s2 = inlined_call_operand.hbm [shape: bf16[1,16,16], index: 2, kind: input, shape index: {}]   ;;  %s1240_s3 = inlined_call_operand.hbm [shape: bf16[1,128,128], index: 3, kind: input, shape index: {}]   ;;  %s1241_s4 = inlined_call_operand.hbm [shape: f32[1,16,128], index: 4, kind: output, shape index: {}]  }
   0x1   :  { %10 = vsyncpa [#allocation6], 0 }
   0x2   :  { %11 = vsyncpa [#allocation9], 0 }
   0x3   :  { %12 = vsyncpa [#allocation4], 0  ;;  %s981_s15 = smov [#allocation5]   ;;  %s982_s17 = smov [#allocation2]  }
   0x4   :  { %s30_s16 = sshll.u32 %s981_s15, 4  ;;  %s18_s18 = sshll.u32 %s982_s17, 4  ;;  %s31_s16 = int_to_ptr.vmem [resolvable:$true] %s30_s16  ;;  %s1017_s18 = int_to_ptr.vmem [resolvable:$true] %s18_s18 }
   0x5   :  { %s863_s21 = scalar_lea.hbm %s1238_s1, 256 }
   0x6   :  { %p864_p0 = scmp.ne.s32.totalorder %s1238_s1, %s863_s21  ;;  %p867_p1 = scmp.lt.u32.totalorder %s863_s21, %s1238_s1 }
   0x8   :  { %p869_p2 = pnand %p867_p1, %p864_p0 }
   0xa   :  { %872 = shalt.err (!%p869_p2)
}
   0xb   :  { %s873_s26 = scalar_lea.vmem %s31_s16, 256  ;;  %p878_p4 = scmp.lt.s32.totalorder %s31_s16, %s31_s16 }
   0xc   :  { %p874_p3 = scmp.ne.s32.totalorder %s31_s16, %s873_s26  ;;  %p879_p5 = scmp.lt.s32.totalorder %s873_s26, %s873_s26 }
   0xe   :  { %p880_p6 = por %p879_p5, %p878_p4 }
  0x10   :  { %p881_p7 = pnand %p880_p6, %p874_p3 }
  0x12   :  { %884 = shalt.err (!%p881_p7)
}
  0x13   :  { %s983_s27 = smov 128   ;;  %s984_s28 = smov 8  }
  0x14   :  { %36 = dma.hbm_to_vmem [thread:$0]  %s1238_s1, 256, %s31_s16, [#allocation6], %s983_s27, %s983_s27, %s984_s28  }
  0x15   :  { %s885_s7 = scalar_lea.hbm %s1237_s0, 256 }
  0x16   :  { %p886_p8 = scmp.ne.s32.totalorder %s1237_s0, %s885_s7  ;;  %p889_p9 = scmp.lt.u32.totalorder %s885_s7, %s1237_s0 }
  0x18   :  { %p891_p10 = pnand %p889_p9, %p886_p8 }
  0x1a   :  { %894 = shalt.err (!%p891_p10)
}
  0x1b   :  { %s895_s12 = scalar_lea.vmem %s1017_s18, 256  ;;  %p900_p12 = scmp.lt.s32.totalorder %s1017_s18, %s1017_s18 }
  0x1c   :  { %p896_p11 = scmp.ne.s32.totalorder %s1017_s18, %s895_s12  ;;  %p901_p13 = scmp.lt.s32.totalorder %s895_s12, %s895_s12 }
  0x1e   :  { %p902_p0 = por %p901_p13, %p900_p12 }
  0x20   :  { %p903_p1 = pnand %p902_p0, %p896_p11 }
  0x22   :  { %906 = shalt.err (!%p903_p1)
}
  0x23   :  { %24 = dma.hbm_to_vmem [thread:$0]  %s1237_s0, 256, %s1017_s18, [#allocation3], %s983_s27, %s983_s27, %s984_s28  }
  0x24   :  { %s985_s14 = smov [#allocation7]   ;;  %s907_s19 = scalar_lea.hbm %s1239_s2, 128 }
  0x25   :  { %s42_s15 = sshll.u32 %s985_s14, 4  ;;  %p908_p2 = scmp.ne.s32.totalorder %s1239_s2, %s907_s19  ;;  %s43_s15 = int_to_ptr.vmem [resolvable:$true] %s42_s15 }
  0x26   :  { %p911_p3 = scmp.lt.u32.totalorder %s907_s19, %s1239_s2 }
  0x28   :  { %p913_p4 = pnand %p911_p3, %p908_p2 }
  0x2a   :  { %916 = shalt.err (!%p913_p4)
}
  0x2b   :  { %s917_s24 = scalar_lea.vmem %s43_s15, 128  ;;  %p922_p6 = scmp.lt.s32.totalorder %s43_s15, %s43_s15 }
  0x2c   :  { %p918_p5 = scmp.ne.s32.totalorder %s43_s15, %s917_s24  ;;  %p923_p7 = scmp.lt.s32.totalorder %s917_s24, %s917_s24 }
  0x2e   :  { %p924_p8 = por %p923_p7, %p922_p6 }
  0x30   :  { %p925_p9 = pnand %p924_p8, %p918_p5 }
  0x32   :  { %928 = shalt.err (!%p925_p9)
}
  0x33   :  { %s986_s0 = smov 64   ;;  %s987_s18 = smov 4  }
  0x34   :  { %48 = dma.hbm_to_vmem [thread:$0]  %s1239_s2, 128, %s43_s15, [#allocation6], %s986_s0, %s986_s0, %s987_s18  }
  0x35   :  { %s988_s29 = smov [#allocation8]   ;;  %s929_s7 = scalar_lea.hbm %s1240_s3, 1024 }
  0x36   :  { %s54_s30 = sshll.u32 %s988_s29, 4  ;;  %p930_p10 = scmp.ne.s32.totalorder %s1240_s3, %s929_s7  ;;  %s55_s30 = int_to_ptr.vmem [resolvable:$true] %s54_s30 }
  0x37   :  { %p933_p11 = scmp.lt.u32.totalorder %s929_s7, %s1240_s3 }
  0x39   :  { %p935_p12 = pnand %p933_p11, %p930_p10 }
  0x3b   :  { %938 = shalt.err (!%p935_p12)
}
  0x3c   :  { %s939_s12 = scalar_lea.vmem %s55_s30, 1024  ;;  %p944_p0 = scmp.lt.s32.totalorder %s55_s30, %s55_s30 }
  0x3d   :  { %p940_p13 = scmp.ne.s32.totalorder %s55_s30, %s939_s12  ;;  %p945_p1 = scmp.lt.s32.totalorder %s939_s12, %s939_s12 }
  0x3f   :  { %p946_p2 = por %p945_p1, %p944_p0 }
  0x41   :  { %p947_p3 = pnand %p946_p2, %p940_p13 }
  0x43   :  { %950 = shalt.err (!%p947_p3)
}
  0x44   :  { %60 = dma.hbm_to_vmem [thread:$0]  %s1240_s3, 1024, %s55_s30, [#allocation9], %s986_s0, %s986_s0, %s987_s18  }
  0x45   :  { %973 = dma.done.wait [#allocation3], 256  }
  0x46   :  { %974 = vsyncadd [#allocation3], 4294967040 }
  0x47   :  { %975 = dma.done.wait [#allocation6], 384  }
  0x48   :  { %976 = vsyncadd [#allocation6], 4294966912 }
  0x49   :  { %977 = dma.done.wait [#allocation9], 1024  }
  0x4a   :  { %978 = vsyncadd [#allocation9], 4294966272  ;;  %v989_v0 = vmov 0.0   ;;  %vm990_vm0 = vmmov 0   ;;  %v1084_v1 = vld [vmem:[#allocation8] sm:$0xff]   ;;  %v1087_v2 = vld [vmem:[#allocation8 + $0x8] sm:$0xff]  }
  0x4b   :  { %699 = vmatprep.subr.bf16.mxu0 %v989_v0  ;;  %715 = vmatprep.mubr.msk.bf16.mxu0 %vm990_vm0, %v989_v0  ;;  %v1091_v3 = vld [vmem:[#allocation8 + $0x10] sm:$0xff]   ;;  %v1095_v4 = vld [vmem:[#allocation8 + $0x18] sm:$0xff]   ;;  %v1099_v5 = vld [vmem:[#allocation8 + $0x20] sm:$0xff]   ;;  %vm214_vm1 = vcmask 130048   ;;  %s991_s3 = smov [#allocation10]  }
  0x4c   :  { %719 = vmatprep.subr.bf16.mxu1 %v989_v0  ;;  %721 = vmatprep.mubr.msk.bf16.mxu1 %vm990_vm0, %v989_v0  ;;  %v1103_v6 = vld [vmem:[#allocation8 + $0x28] sm:$0xff]   ;;  %v1105_v7 = vld [vmem:[#allocation2] sm:$0xff]  ;;  %v1107_v8 = vld [vmem:[#allocation2 + $0x8] sm:$0xff]  ;;  %s628_s13 = sshll.u32 %s991_s3, 4  ;;  %s629_s13 = int_to_ptr.vmem [resolvable:$true] %s628_s13 }
  0x4d   :  { %700 = vmatpush3.bf16.msra.mxu0 %v1084_v1  ;;  %v114_v9 = vmul.f32 2.0, %v1105_v7  ;;  %v115_v10 = vmul.f32 2.0, %v1107_v8  ;;  %v1113_v11 = vld [vmem:[#allocation8 + $0x30] sm:$0xff]   ;;  %v1117_v14 = vld [vmem:[#allocation8 + $0x38] sm:$0xff]   ;;  %v76_v22 = vld [vmem:[#allocation5] sm:$0xff]  ;;  %s951_s14 = scalar_lea.vmem %s629_s13, 256  ;;  %p956_p5 = scmp.lt.s32.totalorder %s629_s13, %s629_s13 }
  0x4e   :  { %701 = vmatprep.subr.bf16.mxu0 %v989_v0  ;;  %v1124_v21 = vld [vmem:[#allocation7] sm:$0xff]   ;;  %v77_v23 = vld [vmem:[#allocation5 + $0x8] sm:$0xff]  ;;  %v96_v24 = vmul.f32 10.0, %v76_v22  ;;  %p952_p4 = scmp.ne.s32.totalorder %s629_s13, %s951_s14  ;;  %p957_p6 = scmp.lt.s32.totalorder %s951_s14, %s951_s14 }
  0x4f   :  { %v116_v12 = vsub.f32 1.0, %v114_v9  ;;  %v117_v13 = vsub.f32 1.0, %v115_v10  ;;  %v97_v25 = vmul.f32 10.0, %v77_v23 }
  0x50   :  { %v98_v26 = vsub.f32 0.0, %v96_v24  ;;  %p958_p7 = por %p957_p6, %p956_p5 }
  0x51   :  { %702 = vmatpush3.bf16.msra.mxu0 %v1087_v2  ;;  %v118_v15 = vpack.c.bf16 %v117_v13, %v116_v12  ;;  %v99_v27 = vsub.f32 0.0, %v97_v25 }
  0x52   :  { %703 = vmatprep.subr.bf16.mxu0 %v989_v0  ;;  %v100_v28 = vmul.f32 1.442695, %v98_v26  ;;  %p959_p8 = pnand %p958_p7, %p952_p4 }
  0x53   :  { %v102_v29 = vmul.f32 1.442695, %v99_v27 }
  0x54   :  { %823 = vpow2.f32 %v100_v28 }
  0x55   :  { %704 = vmatpush3.bf16.msra.mxu0 %v1091_v3  ;;  %825 = vpow2.f32 %v102_v29 }
  0x56   :  { %705 = vmatprep.subr.bf16.mxu0 %v989_v0 }
  0x59   :  { %706 = vmatpush3.bf16.msra.mxu0 %v1095_v4 }
  0x5a   :  { %707 = vmatprep.subr.bf16.mxu0 %v989_v0 }
  0x5d   :  { %708 = vmatpush3.bf16.msra.mxu0 %v1099_v5 }
  0x5e   :  { %709 = vmatprep.subr.bf16.mxu0 %v989_v0  ;;  %v824_v30 = vpop.eup %823 }
  0x5f   :  { %v826_v31 = vpop.eup %825  ;;  %v104_v32 = vadd.f32 1.0, %v824_v30 }
  0x60   :  { %v105_v33 = vadd.f32 1.0, %v826_v31 }
  0x61   :  { %710 = vmatpush3.bf16.msra.mxu0 %v1103_v6  ;;  %827 = vrcp.f32 %v104_v32 }
  0x62   :  { %711 = vmatprep.subr.bf16.mxu0 %v989_v0  ;;  %829 = vrcp.f32 %v105_v33 }
  0x65   :  { %712 = vmatpush3.bf16.msra.mxu0 %v1113_v11 }
  0x66   :  { %713 = vmatprep.subr.bf16.mxu0 %v989_v0 }
  0x69   :  { %714 = vmatpush3.bf16.msra.mxu0 %v1117_v14 }
  0x6a   :  { %745 = vmatprep.subr.bf16.mxu0 %v989_v0 }
  0x6b   :  { %v828_v34 = vpop.eup %827 }
  0x6c   :  { %716 = vmatmul.mubr.bf16.vlgmr.msra.gmra.mrb[0].mxu0 %v118_v15  ;;  %v830_v35 = vpop.eup %829  ;;  %v1147_v36 = vmul.f32 2.0, %v828_v34 }
  0x6d   :  { %747 = vmatprep.mubr.msk.bf16.mxu0 %vm990_vm0, %v989_v0  ;;  %v1149_v37 = vmul.f32 2.0, %v830_v35 }
  0x6e   :  { %v112_v38 = vsub.f32 0.0, %v1147_v36 }
  0x6f   :  { %v113_v39 = vsub.f32 0.0, %v1149_v37 }
 0x13f   :  { %v201_v16 = vpop.f32.mrb[0].mxu0 }
 0x140   :  { %v717_v17 = vpop.f32.mrb[1].mxu0 }
 0x141   :  { %v204_v18 = vpop.f32.mrb[2].mxu0 }
 0x142   :  { %v208_v19 = vpack.c.bf16 %v204_v18, %v201_v16  ;;  %v718_v20 = vpop.f32.mrb[3].mxu0 }
 0x144   :  { %720 = vmatpush3.bf16.msra.mxu1 %v208_v19 }
 0x145   :  { %725 = vmatprep.subr.bf16.mxu1 %v989_v0 }
 0x147   :  { %722 = vmatmul.mubr.msk.bf16.vlgmr.msra.gmra.mrb[0].mxu1 %vm214_vm1, %v1124_v21 }
 0x148   :  { %726 = vmatpush3.bf16.msra.mxu1 %v1084_v1  ;;  %741 = vmatprep.mubr.msk.bf16.mxu1 %vm990_vm0, %v989_v0 }
 0x149   :  { %727 = vmatprep.subr.bf16.mxu1 %v989_v0 }
 0x14c   :  { %728 = vmatpush3.bf16.msra.mxu1 %v1087_v2 }
 0x14d   :  { %729 = vmatprep.subr.bf16.mxu1 %v989_v0 }
 0x150   :  { %730 = vmatpush3.bf16.msra.mxu1 %v1091_v3 }
 0x151   :  { %731 = vmatprep.subr.bf16.mxu1 %v989_v0 }
 0x154   :  { %732 = vmatpush3.bf16.msra.mxu1 %v1095_v4 }
 0x155   :  { %733 = vmatprep.subr.bf16.mxu1 %v989_v0 }
 0x158   :  { %734 = vmatpush3.bf16.msra.mxu1 %v1099_v5 }
 0x159   :  { %735 = vmatprep.subr.bf16.mxu1 %v989_v0 }
 0x15c   :  { %736 = vmatpush3.bf16.msra.mxu1 %v1103_v6 }
 0x15d   :  { %737 = vmatprep.subr.bf16.mxu1 %v989_v0 }
 0x160   :  { %738 = vmatpush3.bf16.msra.mxu1 %v1113_v11 }
 0x161   :  { %739 = vmatprep.subr.bf16.mxu1 %v989_v0 }
 0x164   :  { %740 = vmatpush3.bf16.msra.mxu1 %v1117_v14 }
 0x165   :  { %751 = vmatprep.subr.bf16.mxu1 %v989_v0 }
 0x21a   :  { %v252_v40 = vpop.f32.mrb[0].mxu1 }
 0x21b   :  { %v259_v41 = vmul.f32 %v252_v40, %v112_v38  ;;  %v723_v42 = vpop.f32.mrb[1].mxu1 }
 0x21c   :  { %v255_v43 = vpop.f32.mrb[2].mxu1 }
 0x21d   :  { %v261_v44 = vsub.f32 0.0, %v259_v41  ;;  %v260_v45 = vmul.f32 %v255_v43, %v113_v39  ;;  %v724_v46 = vpop.f32.mrb[3].mxu1 }
 0x21f   :  { %v263_v47 = vmul.f32 1.442695, %v261_v44  ;;  %v262_v48 = vsub.f32 0.0, %v260_v45 }
 0x221   :  { %831 = vpow2.f32 %v263_v47  ;;  %v265_v49 = vmul.f32 1.442695, %v262_v48 }
 0x223   :  { %833 = vpow2.f32 %v265_v49 }
 0x22b   :  { %v832_v50 = vpop.eup %831 }
 0x22c   :  { %v267_v51 = vadd.f32 1.0, %v832_v50 }
 0x22d   :  { %v834_v52 = vpop.eup %833 }
 0x22e   :  { %835 = vrcp.f32 %v267_v51  ;;  %v268_v53 = vadd.f32 1.0, %v834_v52 }
 0x230   :  { %837 = vrcp.f32 %v268_v53 }
 0x238   :  { %v836_v54 = vpop.eup %835 }
 0x239   :  { %v277_v55 = vmul.f32 2.0, %v836_v54  ;;  %v273_v12 = vsub.f32 %v836_v54, %v1105_v7  ;;  %v369_v39 = vmul.f32 0.5, %v836_v54 }
 0x23a   :  { %v1153_v56 = vpop.eup %837 }
 0x23b   :  { %v278_v57 = vmul.f32 2.0, %v1153_v56  ;;  %v279_v58 = vsub.f32 1.0, %v277_v55  ;;  %v274_v13 = vsub.f32 %v1153_v56, %v1107_v8  ;;  %v275_v16 = vmul.f32 2.0, %v273_v12 }
 0x23c   :  { %v370_v43 = vmul.f32 0.5, %v1153_v56 }
 0x23d   :  { %v280_v59 = vsub.f32 1.0, %v278_v57  ;;  %v276_v22 = vmul.f32 2.0, %v274_v13 }
 0x23f   :  { %v281_v60 = vpack.c.bf16 %v280_v59, %v279_v58 }
 0x241   :  { %742 = vmatmul.mubr.bf16.vlgmr.msra.gmra.mrb[4].mxu1 %v281_v60 }
 0x242   :  { %752 = vmatpush3.bf16.msra.mxu1 %v1084_v1  ;;  %767 = vmatprep.mubr.msk.bf16.mxu1 %vm990_vm0, %v989_v0 }
 0x243   :  { %753 = vmatprep.subr.bf16.mxu1 %v989_v0 }
 0x246   :  { %754 = vmatpush3.bf16.msra.mxu1 %v1087_v2 }
 0x247   :  { %755 = vmatprep.subr.bf16.mxu1 %v989_v0 }
 0x24a   :  { %756 = vmatpush3.bf16.msra.mxu1 %v1091_v3 }
 0x24b   :  { %757 = vmatprep.subr.bf16.mxu1 %v989_v0 }
 0x24e   :  { %758 = vmatpush3.bf16.msra.mxu1 %v1095_v4 }
 0x24f   :  { %759 = vmatprep.subr.bf16.mxu1 %v989_v0 }
 0x252   :  { %760 = vmatpush3.bf16.msra.mxu1 %v1099_v5 }
 0x253   :  { %761 = vmatprep.subr.bf16.mxu1 %v989_v0 }
 0x256   :  { %762 = vmatpush3.bf16.msra.mxu1 %v1103_v6 }
 0x257   :  { %763 = vmatprep.subr.bf16.mxu1 %v989_v0 }
 0x25a   :  { %764 = vmatpush3.bf16.msra.mxu1 %v1113_v11 }
 0x25b   :  { %765 = vmatprep.subr.bf16.mxu1 %v989_v0 }
 0x25e   :  { %766 = vmatpush3.bf16.msra.mxu1 %v1117_v14 }
 0x25f   :  { %797 = vmatprep.subr.bf16.mxu1 %v989_v0 }
 0x314   :  { %v316_v61 = vpop.f32.mrb[4].mxu1 }
 0x315   :  { %v743_v62 = vpop.f32.mrb[5].mxu1 }
 0x316   :  { %v319_v63 = vpop.f32.mrb[6].mxu1 }
 0x317   :  { %v323_v9 = vpack.c.bf16 %v319_v63, %v316_v61  ;;  %v744_v10 = vpop.f32.mrb[7].mxu1 }
 0x319   :  { %746 = vmatpush3.bf16.msra.mxu0 %v323_v9 }
 0x31a   :  { %771 = vmatprep.subr.bf16.mxu0 %v989_v0 }
 0x31c   :  { %748 = vmatmul.mubr.msk.bf16.vlgmr.msra.gmra.mrb[4].mxu0 %vm214_vm1, %v1124_v21 }
 0x31d   :  { %773 = vmatprep.mubr.msk.bf16.mxu0 %vm990_vm0, %v989_v0 }
 0x3ef   :  { %v358_v15 = vpop.f32.mrb[4].mxu0 }
 0x3f0   :  { %v365_v17 = vmul.f32 %v358_v15, %v1147_v36  ;;  %v749_v18 = vpop.f32.mrb[5].mxu0 }
 0x3f1   :  { %v361_v19 = vpop.f32.mrb[6].mxu0 }
 0x3f2   :  { %v367_v20 = vadd.f32 %v365_v17, %v275_v16  ;;  %v366_v23 = vmul.f32 %v361_v19, %v1149_v37  ;;  %v750_v24 = vpop.f32.mrb[7].mxu0 }
 0x3f4   :  { %v371_v25 = vsub.f32 0.0, %v367_v20  ;;  %v368_v26 = vadd.f32 %v366_v23, %v276_v22 }
 0x3f6   :  { %v373_v27 = vsub.f32 0.0, %v371_v25  ;;  %v372_v28 = vsub.f32 0.0, %v368_v26 }
 0x3f8   :  { %v375_v29 = vmul.f32 1.442695, %v373_v27  ;;  %v374_v30 = vsub.f32 0.0, %v372_v28 }
 0x3fa   :  { %839 = vpow2.f32 %v375_v29  ;;  %v377_v31 = vmul.f32 1.442695, %v374_v30 }
 0x3fc   :  { %841 = vpow2.f32 %v377_v31 }
 0x404   :  { %v840_v32 = vpop.eup %839 }
 0x405   :  { %v379_v33 = vadd.f32 1.0, %v840_v32 }
 0x406   :  { %v842_v34 = vpop.eup %841 }
 0x407   :  { %843 = vrcp.f32 %v379_v33  ;;  %v380_v35 = vadd.f32 1.0, %v842_v34 }
 0x409   :  { %845 = vrcp.f32 %v380_v35 }
 0x411   :  { %v844_v38 = vpop.eup %843 }
 0x412   :  { %v385_v40 = vmul.f32 0.5, %v844_v38 }
 0x413   :  { %v846_v41 = vpop.eup %845 }
 0x414   :  { %v387_v42 = vadd.f32 %v385_v40, %v369_v39  ;;  %v386_v44 = vmul.f32 0.5, %v846_v41 }
 0x416   :  { %v1185_v45 = vadd.f32 %v386_v44, %v370_v43  ;;  %v393_v46 = vmul.f32 2.0, %v387_v42  ;;  %v485_v17 = vmul.f32 0.5, %v387_v42 }
 0x418   :  { %v394_v47 = vmul.f32 2.0, %v1185_v45  ;;  %v395_v48 = vsub.f32 1.0, %v393_v46  ;;  %v486_v22 = vmul.f32 0.5, %v1185_v45 }
 0x41a   :  { %v396_v49 = vsub.f32 1.0, %v394_v47 }
 0x41c   :  { %v397_v50 = vpack.c.bf16 %v396_v49, %v395_v48 }
 0x41e   :  { %768 = vmatmul.mubr.bf16.vlgmr.msra.gmra.mrb[8].mxu1 %v397_v50 }
 0x41f   :  { %799 = vmatprep.mubr.msk.bf16.mxu1 %vm990_vm0, %v989_v0 }
 0x4f1   :  { %v432_v51 = vpop.f32.mrb[8].mxu1 }
 0x4f2   :  { %v769_v52 = vpop.f32.mrb[9].mxu1 }
 0x4f3   :  { %v435_v53 = vpop.f32.mrb[10].mxu1 }
 0x4f4   :  { %v439_v54 = vpack.c.bf16 %v435_v53, %v432_v51  ;;  %v770_v55 = vpop.f32.mrb[11].mxu1 }
 0x4f6   :  { %772 = vmatpush3.bf16.msra.mxu0 %v439_v54 }
 0x4f7   :  { %777 = vmatprep.subr.bf16.mxu0 %v989_v0 }
 0x4f9   :  { %774 = vmatmul.mubr.msk.bf16.vlgmr.msra.gmra.mrb[8].mxu0 %vm214_vm1, %v1124_v21 }
 0x4fa   :  { %778 = vmatpush3.bf16.msra.mxu0 %v1084_v1  ;;  %793 = vmatprep.mubr.msk.bf16.mxu0 %vm990_vm0, %v989_v0  ;;  %v389_v1 = vsub.f32 %v387_v42, %v1105_v7 }
 0x4fb   :  { %779 = vmatprep.subr.bf16.mxu0 %v989_v0 }
 0x4fe   :  { %780 = vmatpush3.bf16.msra.mxu0 %v1087_v2  ;;  %v390_v2 = vsub.f32 %v1185_v45, %v1107_v8 }
 0x4ff   :  { %781 = vmatprep.subr.bf16.mxu0 %v989_v0 }
 0x500   :  { %v392_v58 = vmul.f32 2.0, %v390_v2 }
 0x502   :  { %782 = vmatpush3.bf16.msra.mxu0 %v1091_v3 }
 0x503   :  { %783 = vmatprep.subr.bf16.mxu0 %v989_v0 }
 0x506   :  { %784 = vmatpush3.bf16.msra.mxu0 %v1095_v4  ;;  %v391_v4 = vmul.f32 2.0, %v389_v1 }
 0x507   :  { %785 = vmatprep.subr.bf16.mxu0 %v989_v0 }
 0x50a   :  { %786 = vmatpush3.bf16.msra.mxu0 %v1099_v5 }
 0x50b   :  { %787 = vmatprep.subr.bf16.mxu0 %v989_v0 }
 0x50e   :  { %788 = vmatpush3.bf16.msra.mxu0 %v1103_v6 }
 0x50f   :  { %789 = vmatprep.subr.bf16.mxu0 %v989_v0 }
 0x512   :  { %790 = vmatpush3.bf16.msra.mxu0 %v1113_v11 }
 0x513   :  { %791 = vmatprep.subr.bf16.mxu0 %v989_v0 }
 0x516   :  { %792 = vmatpush3.bf16.msra.mxu0 %v1117_v14 }
 0x5cc   :  { %v474_v3 = vpop.f32.mrb[8].mxu0 }
 0x5cd   :  { %v481_v5 = vmul.f32 %v474_v3, %v1147_v36  ;;  %v775_v56 = vpop.f32.mrb[9].mxu0 }
 0x5ce   :  { %v477_v57 = vpop.f32.mrb[10].mxu0 }
 0x5cf   :  { %v483_v6 = vadd.f32 %v481_v5, %v391_v4  ;;  %v482_v59 = vmul.f32 %v477_v57, %v1149_v37  ;;  %v776_v11 = vpop.f32.mrb[11].mxu0 }
 0x5d1   :  { %v487_v60 = vsub.f32 0.0, %v483_v6  ;;  %v484_v0 = vadd.f32 %v482_v59, %v392_v58 }
 0x5d3   :  { %v489_v61 = vsub.f32 0.0, %v487_v60  ;;  %v488_v14 = vsub.f32 0.0, %v484_v0 }
 0x5d5   :  { %v491_v62 = vmul.f32 1.442695, %v489_v61  ;;  %v490_v63 = vsub.f32 0.0, %v488_v14 }
 0x5d7   :  { %847 = vpow2.f32 %v491_v62  ;;  %v493_v9 = vmul.f32 1.442695, %v490_v63 }
 0x5d9   :  { %849 = vpow2.f32 %v493_v9 }
 0x5e1   :  { %v848_v10 = vpop.eup %847 }
 0x5e2   :  { %v495_v12 = vadd.f32 1.0, %v848_v10 }
 0x5e3   :  { %v850_v13 = vpop.eup %849 }
 0x5e4   :  { %851 = vrcp.f32 %v495_v12  ;;  %v496_v15 = vadd.f32 1.0, %v850_v13 }
 0x5e6   :  { %853 = vrcp.f32 %v496_v15 }
 0x5ee   :  { %v852_v16 = vpop.eup %851 }
 0x5ef   :  { %v501_v18 = vmul.f32 0.5, %v852_v16 }
 0x5f0   :  { %v854_v19 = vpop.eup %853 }
 0x5f1   :  { %v503_v20 = vadd.f32 %v501_v18, %v485_v17  ;;  %v502_v23 = vmul.f32 0.5, %v854_v19 }
 0x5f3   :  { %v504_v24 = vadd.f32 %v502_v23, %v486_v22  ;;  %v509_v25 = vmul.f32 2.0, %v503_v20  ;;  %v505_v35 = vsub.f32 %v503_v20, %v1105_v7  ;;  %v601_v1 = vmul.f32 0.5, %v503_v20 }
 0x5f5   :  { %v510_v26 = vmul.f32 2.0, %v504_v24  ;;  %v511_v27 = vsub.f32 1.0, %v509_v25  ;;  %v506_v38 = vsub.f32 %v504_v24, %v1107_v8  ;;  %v507_v40 = vmul.f32 2.0, %v505_v35 }
 0x5f6   :  { %v602_v3 = vmul.f32 0.5, %v504_v24 }
 0x5f7   :  { %v512_v28 = vsub.f32 1.0, %v510_v26  ;;  %v508_v45 = vmul.f32 2.0, %v506_v38 }
 0x5f9   :  { %v513_v29 = vpack.c.bf16 %v512_v28, %v511_v27 }
 0x5fb   :  { %794 = vmatmul.mubr.bf16.vlgmr.msra.gmra.mrb[12].mxu0 %v513_v29 }
 0x6ce   :  { %v548_v30 = vpop.f32.mrb[12].mxu0 }
 0x6cf   :  { %v795_v31 = vpop.f32.mrb[13].mxu0 }
 0x6d0   :  { %v551_v32 = vpop.f32.mrb[14].mxu0 }
 0x6d1   :  { %v555_v33 = vpack.c.bf16 %v551_v32, %v548_v30  ;;  %v796_v34 = vpop.f32.mrb[15].mxu0 }
 0x6d3   :  { %798 = vmatpush3.bf16.msra.mxu1 %v555_v33 }
 0x6d6   :  { %800 = vmatmul.mubr.msk.bf16.vlgmr.msra.gmra.mrb[12].mxu1 %vm214_vm1, %v1124_v21 }
 0x7a9   :  { %v590_v39 = vpop.f32.mrb[12].mxu1 }
 0x7aa   :  { %v597_v41 = vmul.f32 %v590_v39, %v1147_v36  ;;  %v801_v42 = vpop.f32.mrb[13].mxu1 }
 0x7ab   :  { %v593_v43 = vpop.f32.mrb[14].mxu1 }
 0x7ac   :  { %v599_v44 = vadd.f32 %v597_v41, %v507_v40  ;;  %v598_v46 = vmul.f32 %v593_v43, %v1149_v37  ;;  %v802_v47 = vpop.f32.mrb[15].mxu1 }
 0x7ae   :  { %v603_v48 = vsub.f32 0.0, %v599_v44  ;;  %v600_v49 = vadd.f32 %v598_v46, %v508_v45 }
 0x7b0   :  { %v605_v50 = vsub.f32 0.0, %v603_v48  ;;  %v604_v51 = vsub.f32 0.0, %v600_v49 }
 0x7b2   :  { %v607_v21 = vmul.f32 1.442695, %v605_v50  ;;  %v606_v52 = vsub.f32 0.0, %v604_v51 }
 0x7b4   :  { %855 = vpow2.f32 %v607_v21  ;;  %v609_v7 = vmul.f32 1.442695, %v606_v52 }
 0x7b6   :  { %857 = vpow2.f32 %v609_v7 }
 0x7be   :  { %v856_v8 = vpop.eup %855 }
 0x7bf   :  { %v611_v53 = vadd.f32 1.0, %v856_v8 }
 0x7c0   :  { %v858_v54 = vpop.eup %857 }
 0x7c1   :  { %859 = vrcp.f32 %v611_v53  ;;  %v612_v36 = vadd.f32 1.0, %v858_v54 }
 0x7c3   :  { %861 = vrcp.f32 %v612_v36 }
 0x7cb   :  { %v860_v55 = vpop.eup %859 }
 0x7cc   :  { %v617_v2 = vmul.f32 0.5, %v860_v55 }
 0x7cd   :  { %v862_v37 = vpop.eup %861 }
 0x7ce   :  { %v618_v4 = vmul.f32 0.5, %v862_v37  ;;  %v619_v5 = vadd.f32 %v617_v2, %v601_v1 }
 0x7d0   :  { %v620_v56 = vadd.f32 %v618_v4, %v602_v3  ;;  %621 = vst [vmem:[#allocation10] sm:$0xff] %v619_v5 }
 0x7d2   :  { %622 = vst [vmem:[#allocation10 + $0x8] sm:$0xff] %v620_v56 }
 0x7d3   :  { %962 = shalt.err (!%p959_p8)
}
 0x7d4   :  { %s963_s17 = scalar_lea.hbm %s1241_s4, 256 }
 0x7d5   :  { %p964_p9 = scmp.ne.s32.totalorder %s1241_s4, %s963_s17  ;;  %p967_p10 = scmp.lt.u32.totalorder %s963_s17, %s1241_s4 }
 0x7d7   :  { %p969_p11 = pnand %p967_p10, %p964_p9 }
 0x7d9   :  { %972 = shalt.err (!%p969_p11)
}
 0x7da   :  { %634 = dma.vmem_to_hbm [thread:$0]  %s629_s13, 256, %s1241_s4, [#allocation4], %s983_s27, %s983_s27, %s984_s28  }
 0x7db   :  { %979 = dma.done.wait [#allocation4], 256  }
 0x7dc   :  { %980 = vsyncadd [#allocation4], 4294967040 }
 0x7dd   :  { %638 = vsyncpa [#allocation3], 1 }
 0x7de   :  { %639 = vsyncpa [#allocation6], 1 }
 0x7df   :  { %640 = vsyncpa [#allocation9], 1 }
 0x7e0   :  { %641 = vsyncpa [#allocation4], 1 }

</bundles_post_ra>
